<compile_context>
chip_gen: v7x
topology: tpu7x:2x2x1
jax: 0.10.0
libtpu: 0.0.40
codegen_flags: <defaults>
</compile_context>

<pallas_src>
import functools

import jax
import jax.numpy as jnp
from jax import lax
from jax.experimental import pallas as pl
from jax.experimental.pallas import tpu as pltpu

_SQRT2 = 1.4142135623730951
_LN_EPS = 1e-5                      # PyTorch nn.LayerNorm default
_VMEM_LIMIT = 64 * 1024 * 1024      # raise scoped VMEM above the 16/32 MiB defaults


def _gelu_exact(x):
    # PyTorch nn.GELU() default = exact erf formulation.
    return 0.5 * x * (1.0 + lax.erf(x / _SQRT2))


def _layer_norm(x, gamma, beta, eps):
    mean = jnp.mean(x, axis=-1, keepdims=True)
    xc = x - mean
    var = jnp.mean(xc * xc, axis=-1, keepdims=True)
    return xc * lax.rsqrt(var + eps) * gamma + beta


def _pick_tile(dim, pref):
    """Largest 'nice' tile that divides dim (full dim as fallback)."""
    for t in (pref, 2048, 1024, 512, 256, 128):
        if t <= dim and dim % t == 0:
            return t
    return dim


# ----------------------------- kernels ------------------------------------ #

def _linear_kernel(x_ref, w_ref, b_ref, o_ref, acc_ref):
    # layer_1:  y = x @ W + b   (grid = (N/tn parallel, K/tk arbitrary))
    k = pl.program_id(1)

    @pl.when(k == 0)
    def _():
        acc_ref[...] = jnp.zeros_like(acc_ref)

    acc_ref[...] += jnp.dot(x_ref[...].astype(jnp.bfloat16), w_ref[...],
                            preferred_element_type=jnp.float32)

    @pl.when(k == pl.num_programs(1) - 1)
    def _():
        o_ref[...] = acc_ref[...] + b_ref[...]


def _ln_mm_body(x_ref, g_ref, be_ref, w_ref, xn_ref, acc_ref, *, eps, tk):
    # Shared body: LN hoisted to k==0 (once per output tile), then one
    # (B, tk) x (tk, tn) MXU step per K block accumulated in f32.
    k = pl.program_id(1)

    @pl.when(k == 0)
    def _():
        xn = _layer_norm(x_ref[...], g_ref[...], be_ref[...], eps)
        xn_ref[...] = xn.astype(xn_ref.dtype)
        acc_ref[...] = jnp.zeros_like(acc_ref)

    start = pl.multiple_of(k * tk, tk)
    xk = xn_ref[:, pl.ds(start, tk)]
    acc_ref[...] += jnp.dot(xk, w_ref[...], preferred_element_type=jnp.float32)


def _ln_linear_gelu_kernel(x_ref, g_ref, be_ref, w_ref, b_ref, o_ref,
                           xn_ref, acc_ref, *, eps, tk):
    # y = GELU( LayerNorm(x) @ W + b )
    _ln_mm_body(x_ref, g_ref, be_ref, w_ref, xn_ref, acc_ref, eps=eps, tk=tk)

    @pl.when(pl.program_id(1) == pl.num_programs(1) - 1)
    def _():
        o_ref[...] = _gelu_exact(acc_ref[...] + b_ref[...]).astype(o_ref.dtype)


def _ln_linear_gelu_ln_kernel(x_ref, g_ref, be_ref, w_ref, b_ref,
                              fg_ref, fb_ref, o_ref, xn_ref, acc_ref,
                              *, eps, tk):
    # y = LayerNorm( GELU( LayerNorm(x) @ W + b ) )  -- fused trailing norm_6
    # (only used when N fits a single output tile, so the row LN is exact).
    _ln_mm_body(x_ref, g_ref, be_ref, w_ref, xn_ref, acc_ref, eps=eps, tk=tk)

    @pl.when(pl.program_id(1) == pl.num_programs(1) - 1)
    def _():
        y = _gelu_exact(acc_ref[...] + b_ref[...])
        o_ref[...] = _layer_norm(y, fg_ref[...], fb_ref[...], eps).astype(o_ref.dtype)


def _layernorm_kernel(x_ref, g_ref, be_ref, o_ref, *, eps):
    # standalone final LayerNorm (fallback when the fusion above is not legal)
    o_ref[...] = _layer_norm(x_ref[...], g_ref[...], be_ref[...], eps)


# ----------------------------- wrappers ------------------------------------ #

def _cost(B, K, N, *, transcendental=False):
    return pl.CostEstimate(
        flops=2 * B * K * N,
        transcendentals=(B * N) if transcendental else 0,
        bytes_accessed=K * N * 2 + (B * K + B * N + 3 * N) * 4,
    )


def pallas_linear(x, w, b, *, tn=1024, tk=2048):
    B, K = x.shape
    K2, N = w.shape
    assert K == K2
    tn = _pick_tile(N, tn)
    tk = _pick_tile(K, tk)
    return pl.pallas_call(
        _linear_kernel,
        out_shape=jax.ShapeDtypeStruct((B, N), jnp.float32),
        grid_spec=pltpu.PrefetchScalarGridSpec(
            num_scalar_prefetch=0,
            grid=(N // tn, K // tk),
            in_specs=[
                pl.BlockSpec((B, tk), lambda j, k: (0, k)),
                pl.BlockSpec((tk, tn), lambda j, k: (k, j)),
                pl.BlockSpec((1, tn), lambda j, k: (0, j)),
            ],
            out_specs=pl.BlockSpec((B, tn), lambda j, k: (0, j)),
            scratch_shapes=[pltpu.VMEM((B, tn), jnp.float32)],
        ),
        compiler_params=pltpu.CompilerParams(
            dimension_semantics=("parallel", "arbitrary"),
            vmem_limit_bytes=_VMEM_LIMIT),
        cost_estimate=_cost(B, K, N),
    )(x, w, b)


def pallas_ln_linear_gelu(x, gamma, beta, w, b,
                          final_gamma=None, final_beta=None,
                          *, tn=1024, tk=2048):
    """GELU(LayerNorm(x) @ W + b); optionally fuses a trailing LayerNorm."""
    B, K = x.shape
    K2, N = w.shape
    assert K == K2
    tn = _pick_tile(N, tn)
    tk = _pick_tile(K, tk)
    nj, nk = N // tn, K // tk

    fuse_final = final_gamma is not None and nj == 1

    common_in_specs = [
        pl.BlockSpec((B, K), lambda j, k: (0, 0)),     # x  (constant block)
        pl.BlockSpec((1, K), lambda j, k: (0, 0)),     # gamma
        pl.BlockSpec((1, K), lambda j, k: (0, 0)),     # beta
        pl.BlockSpec((tk, tn), lambda j, k: (k, j)),   # W (bf16 stream)
        pl.BlockSpec((1, tn), lambda j, k: (0, j)),    # b
    ]
    scratch = [pltpu.VMEM((B, K), jnp.bfloat16),       # normalized activations
               pltpu.VMEM((B, tn), jnp.float32)]       # accumulator
    cparams = pltpu.CompilerParams(
        dimension_semantics=("parallel", "arbitrary"),
        vmem_limit_bytes=_VMEM_LIMIT)

    if fuse_final:
        kernel = functools.partial(_ln_linear_gelu_ln_kernel, eps=_LN_EPS, tk=tk)
        in_specs = common_in_specs + [
            pl.BlockSpec((1, N), lambda j, k: (0, 0)),
            pl.BlockSpec((1, N), lambda j, k: (0, 0)),
        ]
        args = (x, gamma, beta, w, b, final_gamma, final_beta)
    else:
        kernel = functools.partial(_ln_linear_gelu_kernel, eps=_LN_EPS, tk=tk)
        in_specs = common_in_specs
        args = (x, gamma, beta, w, b)

    out = pl.pallas_call(
        kernel,
        out_shape=jax.ShapeDtypeStruct((B, N), jnp.float32),
        grid_spec=pltpu.PrefetchScalarGridSpec(
            num_scalar_prefetch=0,
            grid=(nj, nk),
            in_specs=in_specs,
            out_specs=pl.BlockSpec((B, tn), lambda j, k: (0, j)),
            scratch_shapes=scratch,
        ),
        compiler_params=cparams,
        cost_estimate=_cost(B, K, N, transcendental=True),
    )(*args)

    if final_gamma is not None and not fuse_final:
        out = pallas_layernorm(out, final_gamma, final_beta)
    return out


def pallas_layernorm(x, gamma, beta):
    B, K = x.shape
    kernel = functools.partial(_layernorm_kernel, eps=_LN_EPS)
    return pl.pallas_call(
        kernel,
        out_shape=jax.ShapeDtypeStruct((B, K), jnp.float32),
        grid_spec=pltpu.PrefetchScalarGridSpec(
            num_scalar_prefetch=0,
            grid=(1,),
            in_specs=[
                pl.BlockSpec((B, K), lambda i: (0, 0)),
                pl.BlockSpec((1, K), lambda i: (0, 0)),
                pl.BlockSpec((1, K), lambda i: (0, 0)),
            ],
            out_specs=pl.BlockSpec((B, K), lambda i: (0, 0)),
        ),
        compiler_params=pltpu.CompilerParams(vmem_limit_bytes=_VMEM_LIMIT),
    )(x, gamma, beta)


# ----------------------------- model --------------------------------------- #

def init_params(key, dims):
    """dims = [input_size, D1, D2, D3, D3, D3, D3]; list of per-layer params.

    Weights are stored in bf16 (streamed bf16 from HBM, f32 accumulation);
    biases and LayerNorm affine params stay f32.
    """
    params = []
    for i in range(len(dims) - 1):
        fan_in, fan_out = dims[i], dims[i + 1]
        key, kw, kb, kg, kbe = jax.random.split(key, 5)
        bound = 1.0 / jnp.sqrt(fan_in)
        w = jax.random.uniform(kw, (fan_in, fan_out), jnp.float32, -bound, bound)
        b = jax.random.uniform(kb, (1, fan_out), jnp.float32, -bound, bound)
        gamma = 1.0 + 0.02 * jax.random.normal(kg, (1, fan_out), jnp.float32)
        beta = 0.02 * jax.random.normal(kbe, (1, fan_out), jnp.float32)
        params.append(dict(w=w.astype(jnp.bfloat16), b=b, gamma=gamma, beta=beta))
    return params


def pyramid_mlp_pallas(x_nchw, params):
    B = x_nchw.shape[0]
    x = x_nchw.reshape(B, -1).astype(jnp.float32)       # nn.Flatten()
    # layer_1
    x = pallas_linear(x, params[0]["w"], params[0]["b"])
    # x = drop(act(layer_{i+1}(norm_i(x))))  for i = 1..5 ; drop p=0 -> identity
    for i in range(1, 6):
        is_last = i == 5
        x = pallas_ln_linear_gelu(
            x, params[i - 1]["gamma"], params[i - 1]["beta"],
            params[i]["w"], params[i]["b"],
            # norm_6 fused into the last matmul kernel
            final_gamma=params[5]["gamma"] if is_last else None,
            final_beta=params[5]["beta"] if is_last else None)
    return x


def pyramid_mlp_ref(x_nchw, params):
    """Pure-jnp reference matching the PyTorch forward (eval mode), f32 math
    with the stored (bf16) weights upcast."""
    def ln(x, g, b):
        m = jnp.mean(x, axis=-1, keepdims=True)
        v = jnp.mean((x - m) ** 2, axis=-1, keepdims=True)
        return (x - m) / jnp.sqrt(v + _LN_EPS) * g + b

    B = x_nchw.shape[0]
    x = x_nchw.reshape(B, -1).astype(jnp.float32)
    x = x @ params[0]["w"].astype(jnp.float32) + params[0]["b"]
    for i in range(1, 6):
        x = ln(x, params[i - 1]["gamma"], params[i - 1]["beta"])
        x = x @ params[i]["w"].astype(jnp.float32) + params[i]["b"]
        x = _gelu_exact(x)
    x = ln(x, params[5]["gamma"], params[5]["beta"])
    return x


if __name__ == "__main__":
    key = jax.random.PRNGKey(0)
    kx, kp = jax.random.split(key)

    # Small shapes consistent with the module's forward (NCHW image -> flatten).
    B, C, H, W = 2, 4, 16, 16
    input_size = C * H * W                      # 1024
    D1, D2, D3 = 512, 256, 128                  # pyramid (stand-ins for 100000/25000/10000)
    dims = [input_size, D1, D2, D3, D3, D3, D3]

    x = jax.random.normal(kx, (B, C, H, W), jnp.float32)
    params = init_params(kp, dims)

    out = jax.block_until_ready(pyramid_mlp_pallas(x, params))
    ref = pyramid_mlp_ref(x, params)

    assert out.shape == (B, D3), out.shape
    # bf16 activation quantization in the kernel vs f32 reference -> loosened tol.
    assert jnp.allclose(out, ref, atol=3e-2, rtol=3e-2), float(jnp.max(jnp.abs(out - ref)))
    print("KERNEL_OK")
</pallas_src>

<mosaic_0001>
module attributes {stable_mosaic.version = 11 : i64} {
  func.func @_linear_kernel(%arg0: i32, %arg1: i32, %arg2: memref<2x1024xf32, #tpu.memory_space<vmem>>, %arg3: memref<1024x512xbf16, #tpu.memory_space<vmem>>, %arg4: memref<1x512xf32, #tpu.memory_space<vmem>>, %arg5: memref<2x512xf32, #tpu.memory_space<vmem>>, %arg6: memref<2x512xf32, #tpu.memory_space<vmem>>) attributes {dimension_semantics = [#tpu.dimension_semantics<parallel>, #tpu.dimension_semantics<arbitrary>], iteration_bounds = array<i64: 1, 1>, scalar_prefetch = 0 : i64, scratch_operands = 1 : i64, tpu.core_type = #tpu.core_type<tc>, window_params = [{transform_indices = @transform_0, window_bounds = array<i64: 2, 1024>}, {transform_indices = @transform_1, window_bounds = array<i64: 1024, 512>}, {transform_indices = @transform_2, window_bounds = array<i64: 1, 512>}, {transform_indices = @transform_3, window_bounds = array<i64: 2, 512>}]} {
    %c0_i32 = arith.constant 0 : i32
    %0 = arith.cmpi eq, %arg1, %c0_i32 : i32
    %1 = arith.extui %0 : i1 to i32
    %c0_i32_0 = arith.constant 0 : i32
    %2 = arith.cmpi ne, %1, %c0_i32_0 : i32
    scf.if %2 {
      %cst_10 = arith.constant 0.000000e+00 : f32
      %13 = vector.broadcast %cst_10 : f32 to vector<2x512xf32>
      %c0_11 = arith.constant 0 : index
      %c0_12 = arith.constant 0 : index
      %14 = vector.load %arg6[%c0_11, %c0_12] : memref<2x512xf32, #tpu.memory_space<vmem>>, vector<2x512xf32>
      tpu.vector_store %arg6[%c0_11, %c0_12], %13 {strides = array<i32>} : memref<2x512xf32, #tpu.memory_space<vmem>>, vector<2x512xf32>,
    } else {
    }
    %c0 = arith.constant 0 : index
    %c0_1 = arith.constant 0 : index
    %3 = vector.load %arg6[%c0, %c0_1] : memref<2x512xf32, #tpu.memory_space<vmem>>, vector<2x512xf32>
    %c0_2 = arith.constant 0 : index
    %c0_3 = arith.constant 0 : index
    %4 = vector.load %arg2[%c0_2, %c0_3] : memref<2x1024xf32, #tpu.memory_space<vmem>>, vector<2x1024xf32>
    %5 = arith.truncf %4 : vector<2x1024xf32> to vector<2x1024xbf16>
    %c0_4 = arith.constant 0 : index
    %c0_5 = arith.constant 0 : index
    %6 = vector.load %arg3[%c0_4, %c0_5] : memref<1024x512xbf16, #tpu.memory_space<vmem>>, vector<1024x512xbf16>
    %cst = arith.constant dense<0.000000e+00> : vector<2x512xf32>
    %7 = tpu.matmul %5, %6, %cst {dimension_numbers = #tpu.dot_dimension_numbers<[1], [0], [0], [1], [0, 0, 1, 1], [], []>} : vector<2x1024xbf16>, vector<1024x512xbf16>, vector<2x512xf32> -> vector<2x512xf32>
    %8 = arith.addf %3, %7 : vector<2x512xf32>
    %c0_6 = arith.constant 0 : index
    %c0_7 = arith.constant 0 : index
    %9 = vector.load %arg6[%c0_6, %c0_7] : memref<2x512xf32, #tpu.memory_space<vmem>>, vector<2x512xf32>
    tpu.vector_store %arg6[%c0_6, %c0_7], %8 {strides = array<i32>} : memref<2x512xf32, #tpu.memory_space<vmem>>, vector<2x512xf32>,
    %c0_i32_8 = arith.constant 0 : i32
    %10 = arith.cmpi eq, %arg1, %c0_i32_8 : i32
    %11 = arith.extui %10 : i1 to i32
    %c0_i32_9 = arith.constant 0 : i32
    %12 = arith.cmpi ne, %11, %c0_i32_9 : i32
    scf.if %12 {
      %c0_10 = arith.constant 0 : index
      %c0_11 = arith.constant 0 : index
      %13 = vector.load %arg6[%c0_10, %c0_11] : memref<2x512xf32, #tpu.memory_space<vmem>>, vector<2x512xf32>
      %c0_12 = arith.constant 0 : index
      %c0_13 = arith.constant 0 : index
      %14 = vector.load %arg4[%c0_12, %c0_13] : memref<1x512xf32, #tpu.memory_space<vmem>>, vector<1x512xf32>
      %15 = vector.broadcast %14 : vector<1x512xf32> to vector<2x512xf32>
      %16 = arith.addf %13, %15 : vector<2x512xf32>
      %c0_14 = arith.constant 0 : index
      %c0_15 = arith.constant 0 : index
      %17 = vector.load %arg5[%c0_14, %c0_15] : memref<2x512xf32, #tpu.memory_space<vmem>>, vector<2x512xf32>
      tpu.vector_store %arg5[%c0_14, %c0_15], %16 {strides = array<i32>} : memref<2x512xf32, #tpu.memory_space<vmem>>, vector<2x512xf32>,
    } else {
    }
    return
  }
  func.func @transform_0(%arg0: i32, %arg1: i32) -> (i32, i32) {
    %c0_i32 = arith.constant 0 : i32
    %c0_i32_0 = arith.constant 0 : i32
    return %c0_i32, %arg1 : i32, i32
  }
  func.func @transform_1(%arg0: i32, %arg1: i32) -> (i32, i32) {
    %c0_i32 = arith.constant 0 : i32
    return %arg1, %arg0 : i32, i32
  }
  func.func @transform_2(%arg0: i32, %arg1: i32) -> (i32, i32) {
    %c0_i32 = arith.constant 0 : i32
    %c0_i32_0 = arith.constant 0 : i32
    return %c0_i32, %arg0 : i32, i32
  }
  func.func @transform_3(%arg0: i32, %arg1: i32) -> (i32, i32) {
    %c0_i32 = arith.constant 0 : i32
    %c0_i32_0 = arith.constant 0 : i32
    return %c0_i32, %arg0 : i32, i32
  }
}

</mosaic_0001>

<bundles_post_ra>
// kernel: tpu_custom_call.1
= control target key start
LH: loop header
LB: loop body
LE: loop exit
PB: predicated region body
PF: predicated region fallthrough
CT: control target
= control target key end

     0   :  { %8 = vsyncpa [#allocation4], 0  ;;  %s2940_s0 = inlined_call_operand.hbm [shape: f32[2,1024], index: 0, kind: input, shape index: {}]   ;;  %s2941_s1 = inlined_call_operand.hbm [shape: bf16[1024,512], index: 1, kind: input, shape index: {}]   ;;  %s2942_s2 = inlined_call_operand.hbm [shape: f32[1,512], index: 2, kind: input, shape index: {}]   ;;  %s2943_s3 = inlined_call_operand.hbm [shape: f32[2,512], index: 3, kind: output, shape index: {}]  }
   0x1   :  { %9 = vsyncpa [#allocation7], 0 }
   0x2   :  { %10 = vsyncpa [#allocation5], 0  ;;  %s2825_s12 = smov [#allocation6]   ;;  %s2731_s16 = scalar_lea.hbm %s2941_s1, 32768 }
   0x3   :  { %s26_s13 = sshll.u32 %s2825_s12, 4  ;;  %p2732_p0 = scmp.ne.s32.totalorder %s2941_s1, %s2731_s16  ;;  %s27_s13 = int_to_ptr.vmem [resolvable:$true] %s26_s13 }
   0x4   :  { %p2735_p1 = scmp.lt.u32.totalorder %s2731_s16, %s2941_s1 }
   0x6   :  { %p2737_p2 = pnand %p2735_p1, %p2732_p0 }
   0x8   :  { %2740 = shalt.err (!%p2737_p2)
}
   0x9   :  { %s2741_s21 = scalar_lea.vmem %s27_s13, 32768  ;;  %p2746_p4 = scmp.lt.s32.totalorder %s27_s13, %s27_s13 }
   0xa   :  { %p2742_p3 = scmp.ne.s32.totalorder %s27_s13, %s2741_s21  ;;  %p2747_p5 = scmp.lt.s32.totalorder %s2741_s21, %s2741_s21 }
   0xc   :  { %p2748_p6 = por %p2747_p5, %p2746_p4 }
   0xe   :  { %p2749_p7 = pnand %p2748_p6, %p2742_p3 }
  0x10   :  { %2752 = shalt.err (!%p2749_p7)
}
  0x11   :  { %s2826_s22 = smov 256   ;;  %s2827_s23 = smov 16  }
  0x12   :  { %32 = dma.hbm_to_vmem [thread:$0]  %s2941_s1, 32768, %s27_s13, [#allocation7], %s2826_s22, %s2826_s22, %s2827_s23  }
  0x13   :  { %s2828_s26 = smov [#allocation3]   ;;  %s2829_s28 = smov [#allocation8]  }
  0x14   :  { %s17_s27 = sshll.u32 %s2828_s26, 4  ;;  %s39_s29 = sshll.u32 %s2829_s28, 4  ;;  %s18_s27 = int_to_ptr.vmem [resolvable:$true] %s17_s27  ;;  %s40_s29 = int_to_ptr.vmem [resolvable:$true] %s39_s29 }
  0x15   :  { %s2753_s5 = scalar_lea.hbm %s2940_s0, 256 }
  0x16   :  { %p2754_p8 = scmp.ne.s32.totalorder %s2940_s0, %s2753_s5  ;;  %p2757_p9 = scmp.lt.u32.totalorder %s2753_s5, %s2940_s0 }
  0x18   :  { %p2759_p10 = pnand %p2757_p9, %p2754_p8 }
  0x1a   :  { %2762 = shalt.err (!%p2759_p10)
}
  0x1b   :  { %s2763_s1 = scalar_lea.vmem %s18_s27, 256  ;;  %p2768_p12 = scmp.lt.s32.totalorder %s18_s27, %s18_s27 }
  0x1c   :  { %p2764_p11 = scmp.ne.s32.totalorder %s18_s27, %s2763_s1  ;;  %p2769_p13 = scmp.lt.s32.totalorder %s2763_s1, %s2763_s1 }
  0x1e   :  { %p2770_p0 = por %p2769_p13, %p2768_p12 }
  0x20   :  { %p2771_p1 = pnand %p2770_p0, %p2764_p11 }
  0x22   :  { %2774 = shalt.err (!%p2771_p1)
}
  0x23   :  { %20 = dma.hbm_to_vmem [thread:$0]  %s2940_s0, 256, %s18_s27, [#allocation4]  }
  0x24   :  { %s2775_s14 = scalar_lea.hbm %s2942_s2, 64 }
  0x25   :  { %p2776_p2 = scmp.ne.s32.totalorder %s2942_s2, %s2775_s14  ;;  %p2779_p3 = scmp.lt.u32.totalorder %s2775_s14, %s2942_s2 }
  0x27   :  { %p2781_p4 = pnand %p2779_p3, %p2776_p2 }
  0x29   :  { %2784 = shalt.err (!%p2781_p4)
}
  0x2a   :  { %s2785_s19 = scalar_lea.vmem %s40_s29, 64  ;;  %p2790_p6 = scmp.lt.s32.totalorder %s40_s29, %s40_s29 }
  0x2b   :  { %p2786_p5 = scmp.ne.s32.totalorder %s40_s29, %s2785_s19  ;;  %p2791_p7 = scmp.lt.s32.totalorder %s2785_s19, %s2785_s19 }
  0x2d   :  { %p2792_p8 = por %p2791_p7, %p2790_p6 }
  0x2f   :  { %p2793_p9 = pnand %p2792_p8, %p2786_p5 }
  0x31   :  { %2796 = shalt.err (!%p2793_p9)
}
  0x32   :  { %42 = dma.hbm_to_vmem [thread:$0]  %s2942_s2, 64, %s40_s29, [#allocation7]  }
  0x33   :  { %2819 = dma.done.wait [#allocation4], 256  }
  0x34   :  { %2820 = vsyncadd [#allocation4], 4294967040 }
  0x35   :  { %2821 = dma.done.wait [#allocation7], 32832  }
  0x36   :  { %2822 = vsyncadd [#allocation7], 4294934464  ;;  %v2345_v0 = vld [vmem:[#allocation6 + $0x4] ss:$16 sps:$4 sm:$0xff]   ;;  %v2347_v1 = vld [vmem:[#allocation6 + $0xc] ss:$16 sps:$4 sm:$0xff]   ;;  %v66_v38 = vlaneseq }
  0x37   :  { %1648 = vmatprep.subr.bf16.mxu0 %v2345_v0  ;;  %v2349_v2 = vld [vmem:[#allocation6] ss:$16 sps:$4 sm:$0xff]   ;;  %v2350_v3 = vld [vmem:[#allocation6 + $0x8] ss:$16 sps:$4 sm:$0xff]   ;;  %1812 = vmatprep.subr.bf16.mxu1 %v2347_v1  ;;  %v2351_v4 = vld [vmem:[#allocation6 + $0x24] ss:$16 sps:$4 sm:$0xff]  }
  0x38   :  { %1649 = vmatpush1.bf16.msra.mxu0 %v2349_v2  ;;  %1813 = vmatpush1.bf16.msra.mxu1 %v2350_v3  ;;  %v2353_v5 = vld [vmem:[#allocation6 + $0x2c] ss:$16 sps:$4 sm:$0xff]   ;;  %v2355_v6 = vld [vmem:[#allocation6 + $0x20] ss:$16 sps:$4 sm:$0xff]   ;;  %v2356_v7 = vld [vmem:[#allocation6 + $0x28] ss:$16 sps:$4 sm:$0xff]  }
  0x39   :  { %1650 = vmatprep.subr.bf16.mxu0 %v2351_v4  ;;  %1814 = vmatprep.subr.bf16.mxu1 %v2353_v5  ;;  %v2357_v8 = vld [vmem:[#allocation6 + $0x44] ss:$16 sps:$4 sm:$0xff]   ;;  %v2359_v9 = vld [vmem:[#allocation6 + $0x4c] ss:$16 sps:$4 sm:$0xff]   ;;  %v2361_v10 = vld [vmem:[#allocation6 + $0x40] ss:$16 sps:$4 sm:$0xff]  }
  0x3a   :  { %v2362_v11 = vld [vmem:[#allocation6 + $0x48] ss:$16 sps:$4 sm:$0xff]   ;;  %v2363_v12 = vld [vmem:[#allocation6 + $0x64] ss:$16 sps:$4 sm:$0xff]   ;;  %v2365_v13 = vld [vmem:[#allocation6 + $0x6c] ss:$16 sps:$4 sm:$0xff]  }
  0x3b   :  { %v2367_v14 = vld [vmem:[#allocation6 + $0x60] ss:$16 sps:$4 sm:$0xff]   ;;  %v2368_v15 = vld [vmem:[#allocation6 + $0x68] ss:$16 sps:$4 sm:$0xff]   ;;  %v2369_v16 = vld [vmem:[#allocation6 + $0x84] ss:$16 sps:$4 sm:$0xff]  }
  0x3c   :  { %1651 = vmatpush1.bf16.msra.mxu0 %v2355_v6  ;;  %1815 = vmatpush1.bf16.msra.mxu1 %v2356_v7  ;;  %v2371_v17 = vld [vmem:[#allocation6 + $0x8c] ss:$16 sps:$4 sm:$0xff]   ;;  %v2373_v18 = vld [vmem:[#allocation6 + $0x80] ss:$16 sps:$4 sm:$0xff]   ;;  %v2374_v19 = vld [vmem:[#allocation6 + $0x88] ss:$16 sps:$4 sm:$0xff]  }
  0x3d   :  { %1652 = vmatprep.subr.bf16.mxu0 %v2357_v8  ;;  %1816 = vmatprep.subr.bf16.mxu1 %v2359_v9  ;;  %v2375_v20 = vld [vmem:[#allocation6 + $0xa4] ss:$16 sps:$4 sm:$0xff]   ;;  %v2377_v21 = vld [vmem:[#allocation6 + $0xac] ss:$16 sps:$4 sm:$0xff]   ;;  %v2379_v22 = vld [vmem:[#allocation6 + $0xa0] ss:$16 sps:$4 sm:$0xff]  }
  0x3e   :  { %v2380_v23 = vld [vmem:[#allocation6 + $0xa8] ss:$16 sps:$4 sm:$0xff]   ;;  %v2381_v24 = vld [vmem:[#allocation6 + $0xc4] ss:$16 sps:$4 sm:$0xff]   ;;  %v2383_v25 = vld [vmem:[#allocation6 + $0xcc] ss:$16 sps:$4 sm:$0xff]  }
  0x3f   :  { %v2385_v26 = vld [vmem:[#allocation6 + $0xc0] ss:$16 sps:$4 sm:$0xff]   ;;  %v2386_v27 = vld [vmem:[#allocation6 + $0xc8] ss:$16 sps:$4 sm:$0xff]   ;;  %v2387_v28 = vld [vmem:[#allocation6 + $0xe4] ss:$16 sps:$4 sm:$0xff]  }
  0x40   :  { %1653 = vmatpush1.bf16.msra.mxu0 %v2361_v10  ;;  %1817 = vmatpush1.bf16.msra.mxu1 %v2362_v11  ;;  %v2389_v29 = vld [vmem:[#allocation6 + $0xec] ss:$16 sps:$4 sm:$0xff]   ;;  %v2391_v30 = vld [vmem:[#allocation6 + $0xe0] ss:$16 sps:$4 sm:$0xff]   ;;  %v2392_v31 = vld [vmem:[#allocation6 + $0xe8] ss:$16 sps:$4 sm:$0xff]  }
  0x41   :  { %1654 = vmatprep.subr.bf16.mxu0 %v2363_v12  ;;  %1818 = vmatprep.subr.bf16.mxu1 %v2365_v13  ;;  %v2393_v32 = vld [vmem:[#allocation6 + $0x104] ss:$16 sps:$4 sm:$0xff]   ;;  %v2395_v33 = vld [vmem:[#allocation6 + $0x10c] ss:$16 sps:$4 sm:$0xff]   ;;  %v2397_v34 = vld [vmem:[#allocation6 + $0x100] ss:$16 sps:$4 sm:$0xff]  }
  0x42   :  { %v2398_v35 = vld [vmem:[#allocation6 + $0x108] ss:$16 sps:$4 sm:$0xff]   ;;  %v2830_v36 = vmov 1983009808   ;;  %v2399_v39 = vld [vmem:[#allocation6 + $0x124] ss:$16 sps:$4 sm:$0xff]  }
  0x43   :  { %v64_v37 = vunpack.c.l.s4 %v2830_v36  ;;  %v2401_v40 = vld [vmem:[#allocation6 + $0x12c] ss:$16 sps:$4 sm:$0xff]   ;;  %v2403_v41 = vld [vmem:[#allocation6 + $0x120] ss:$16 sps:$4 sm:$0xff]   ;;  %v2888_v43 = vshrl.u32 %v66_v38, 7  ;;  %s2831_s2 = smov [#allocation9]  }
  0x44   :  { %1655 = vmatpush1.bf16.msra.mxu0 %v2367_v14  ;;  %1819 = vmatpush1.bf16.msra.mxu1 %v2368_v15  ;;  %v2404_v44 = vld [vmem:[#allocation6 + $0x128] ss:$16 sps:$4 sm:$0xff]   ;;  %v2405_v45 = vld [vmem:[#allocation6 + $0x144] ss:$16 sps:$4 sm:$0xff]   ;;  %v2407_v46 = vld [vmem:[#allocation6 + $0x14c] ss:$16 sps:$4 sm:$0xff]  }
  0x45   :  { %1656 = vmatprep.subr.bf16.mxu0 %v2369_v16  ;;  %1820 = vmatprep.subr.bf16.mxu1 %v2371_v17  ;;  %v65_v42 = vunpack.c.0.s8 %v64_v37  ;;  %v2409_v47 = vld [vmem:[#allocation6 + $0x140] ss:$16 sps:$4 sm:$0xff]   ;;  %v2410_v48 = vld [vmem:[#allocation6 + $0x148] ss:$16 sps:$4 sm:$0xff]   ;;  %v2411_v50 = vld [vmem:[#allocation6 + $0x164] ss:$16 sps:$4 sm:$0xff]  }
  0x46   :  { %v2413_v51 = vld [vmem:[#allocation6 + $0x16c] ss:$16 sps:$4 sm:$0xff]   ;;  %v58_v52 = vld [vmem:[#allocation3] sm:$0xff]  ;;  %v2416_v55 = vld [vmem:[#allocation6 + $0x168] ss:$16 sps:$4 sm:$0xff]   ;;  %s2048_s21 = sshll.u32 %s2831_s2, 4  ;;  %s2049_s21 = int_to_ptr.vmem [resolvable:$true] %s2048_s21 }
  0x47   :  { %v2891_v49 = vsub.s32 %v65_v42, %v2888_v43  ;;  %v2415_v53 = vld [vmem:[#allocation6 + $0x160] ss:$16 sps:$4 sm:$0xff]   ;;  %v2417_v56 = vld [vmem:[#allocation6 + $0x184] ss:$16 sps:$4 sm:$0xff]   ;;  %v2419_v57 = vld [vmem:[#allocation6 + $0x18c] ss:$16 sps:$4 sm:$0xff]   ;;  %v62_v4 = vcombine.high %v58_v52, %v58_v52  ;;  %p2802_p11 = scmp.lt.s32.totalorder %s2049_s21, %s2049_s21 }
  0x48   :  { %1657 = vmatpush1.bf16.msra.mxu0 %v2373_v18  ;;  %1821 = vmatpush1.bf16.msra.mxu1 %v2374_v19  ;;  %v2421_v59 = vld [vmem:[#allocation6 + $0x180] ss:$16 sps:$4 sm:$0xff]   ;;  %v2422_v61 = vld [vmem:[#allocation6 + $0x188] ss:$16 sps:$4 sm:$0xff]   ;;  %v2423_v62 = vld [vmem:[#allocation6 + $0x1a4] ss:$16 sps:$4 sm:$0xff]  }
  0x49   :  { %1658 = vmatprep.subr.bf16.mxu0 %v2375_v20  ;;  %1822 = vmatprep.subr.bf16.mxu1 %v2377_v21  ;;  %v69_v54 = vrot.slane %v58_v52, %v2891_v49  ;;  %v2425_v63 = vld [vmem:[#allocation6 + $0x1ac] ss:$16 sps:$4 sm:$0xff]   ;;  %v2427_v0 = vld [vmem:[#allocation6 + $0x1a0] ss:$16 sps:$4 sm:$0xff]   ;;  %v2428_v1 = vld [vmem:[#allocation6 + $0x1a8] ss:$16 sps:$4 sm:$0xff]   ;;  %v2895_v9 = vrot.slane %v62_v4, %v2891_v49 }
  0x4a   :  { %v2429_v2 = vld [vmem:[#allocation6 + $0x1c4] ss:$16 sps:$4 sm:$0xff]   ;;  %v2431_v3 = vld [vmem:[#allocation6 + $0x1cc] ss:$16 sps:$4 sm:$0xff]   ;;  %v2433_v5 = vld [vmem:[#allocation6 + $0x1c0] ss:$16 sps:$4 sm:$0xff]  }
  0x4b   :  { %v77_v58 = vcombine.high %v69_v54, %v69_v54  ;;  %v2434_v6 = vld [vmem:[#allocation6 + $0x1c8] ss:$16 sps:$4 sm:$0xff]   ;;  %v2435_v7 = vld [vmem:[#allocation6 + $0x1e4] ss:$16 sps:$4 sm:$0xff]   ;;  %v2437_v8 = vld [vmem:[#allocation6 + $0x1ec] ss:$16 sps:$4 sm:$0xff]   ;;  %v78_v14 = vcombine.high %v2895_v9, %v2895_v9  ;;  %v104_v16 = vpack.c.bf16 %v69_v54, %v69_v54 }
  0x4c   :  { %1659 = vmatpush1.bf16.msra.mxu0 %v2379_v22  ;;  %1823 = vmatpush1.bf16.msra.mxu1 %v2380_v23  ;;  %v2439_v10 = vld [vmem:[#allocation6 + $0x1e0] ss:$16 sps:$4 sm:$0xff]   ;;  %v2440_v11 = vld [vmem:[#allocation6 + $0x1e8] ss:$16 sps:$4 sm:$0xff]   ;;  %v2444_v12 = vld [vmem:[#allocation6 + $0x204] ss:$16 sps:$4 sm:$0xff]  }
  0x4d   :  { %1660 = vmatprep.subr.bf16.mxu0 %v2381_v24  ;;  %1824 = vmatprep.subr.bf16.mxu1 %v2383_v25  ;;  %v105_v60 = vpack.c.bf16 %v77_v58, %v77_v58  ;;  %v2447_v13 = vld [vmem:[#allocation6 + $0x20c] ss:$16 sps:$4 sm:$0xff]   ;;  %v2442_v15 = vld [vmem:[#allocation6 + $0x200] ss:$16 sps:$4 sm:$0xff]   ;;  %v2445_v17 = vld [vmem:[#allocation6 + $0x208] ss:$16 sps:$4 sm:$0xff]   ;;  %v107_v20 = vpack.c.bf16 %v78_v14, %v78_v14 }
  0x4e   :  { %v2450_v18 = vld [vmem:[#allocation6 + $0x224] ss:$16 sps:$4 sm:$0xff]   ;;  %v2453_v19 = vld [vmem:[#allocation6 + $0x22c] ss:$16 sps:$4 sm:$0xff]   ;;  %v2448_v21 = vld [vmem:[#allocation6 + $0x220] ss:$16 sps:$4 sm:$0xff]  }
  0x4f   :  { %1680 = vmatprep.mubr.bf16.mxu0 %v105_v60  ;;  %1844 = vmatprep.mubr.bf16.mxu1 %v105_v60  ;;  %v2451_v22 = vld [vmem:[#allocation6 + $0x228] ss:$16 sps:$4 sm:$0xff]   ;;  %v2456_v23 = vld [vmem:[#allocation6 + $0x244] ss:$16 sps:$4 sm:$0xff]   ;;  %v2459_v24 = vld [vmem:[#allocation6 + $0x24c] ss:$16 sps:$4 sm:$0xff]  }
  0x50   :  { %1661 = vmatpush1.bf16.msra.mxu0 %v2385_v26  ;;  %1825 = vmatpush1.bf16.msra.mxu1 %v2386_v27  ;;  %v2454_v25 = vld [vmem:[#allocation6 + $0x240] ss:$16 sps:$4 sm:$0xff]   ;;  %v2457_v26 = vld [vmem:[#allocation6 + $0x248] ss:$16 sps:$4 sm:$0xff]   ;;  %v2462_v27 = vld [vmem:[#allocation6 + $0x264] ss:$16 sps:$4 sm:$0xff]  }
  0x51   :  { %1662 = vmatprep.subr.bf16.mxu0 %v2387_v28  ;;  %1826 = vmatprep.subr.bf16.mxu1 %v2389_v29  ;;  %v2465_v28 = vld [vmem:[#allocation6 + $0x26c] ss:$16 sps:$4 sm:$0xff]   ;;  %v2460_v29 = vld [vmem:[#allocation6 + $0x260] ss:$16 sps:$4 sm:$0xff]   ;;  %v2475_v38 = vld [vmem:[#allocation6 + $0x2a8] ss:$16 sps:$4 sm:$0xff]  }
  0x52   :  { %v2477_v36 = vld [vmem:[#allocation6 + $0x2ac] ss:$16 sps:$4 sm:$0xff]   ;;  %v2472_v37 = vld [vmem:[#allocation6 + $0x2a0] ss:$16 sps:$4 sm:$0xff]   ;;  %v2481_v42 = vld [vmem:[#allocation6 + $0x2c8] ss:$16 sps:$4 sm:$0xff]  }
  0x53   :  { %v2493_v52 = vld [vmem:[#allocation6 + $0x308] ss:$16 sps:$4 sm:$0xff]   ;;  %v2501_v54 = vld [vmem:[#allocation6 + $0x32c] ss:$16 sps:$4 sm:$0xff]   ;;  %v2534_v14 = vld [vmem:[#allocation6 + $0x3e4] ss:$16 sps:$4 sm:$0xff]  }
  0x54   :  { %1663 = vmatpush1.bf16.msra.mxu0 %v2391_v30  ;;  %1827 = vmatpush1.bf16.msra.mxu1 %v2392_v31  ;;  %v2463_v30 = vld [vmem:[#allocation6 + $0x268] ss:$16 sps:$4 sm:$0xff]   ;;  %v2468_v31 = vld [vmem:[#allocation6 + $0x284] ss:$16 sps:$4 sm:$0xff]   ;;  %v2507_v58 = vld [vmem:[#allocation6 + $0x34c] ss:$16 sps:$4 sm:$0xff]  }
  0x55   :  { %1664 = vmatprep.subr.bf16.mxu0 %v2393_v32  ;;  %1828 = vmatprep.subr.bf16.mxu1 %v2395_v33  ;;  %v2471_v32 = vld [vmem:[#allocation6 + $0x28c] ss:$16 sps:$4 sm:$0xff]   ;;  %v2466_v33 = vld [vmem:[#allocation6 + $0x280] ss:$16 sps:$4 sm:$0xff]   ;;  %v2505_v60 = vld [vmem:[#allocation6 + $0x348] ss:$16 sps:$4 sm:$0xff]  }
  0x56   :  { %v2517_v4 = vld [vmem:[#allocation6 + $0x388] ss:$16 sps:$4 sm:$0xff]   ;;  %s2797_s22 = scalar_lea.vmem %s2049_s21, 128 }
  0x57   :  { %p2798_p10 = scmp.ne.s32.totalorder %s2049_s21, %s2797_s22  ;;  %p2803_p12 = scmp.lt.s32.totalorder %s2797_s22, %s2797_s22 }
  0x58   :  { %1665 = vmatpush1.bf16.msra.mxu0 %v2397_v34  ;;  %1829 = vmatpush1.bf16.msra.mxu1 %v2398_v35  ;;  %v2469_v34 = vld [vmem:[#allocation6 + $0x288] ss:$16 sps:$4 sm:$0xff]   ;;  %v2474_v35 = vld [vmem:[#allocation6 + $0x2a4] ss:$16 sps:$4 sm:$0xff]  }
  0x59   :  { %1666 = vmatprep.subr.bf16.mxu0 %v2399_v39  ;;  %1830 = vmatprep.subr.bf16.mxu1 %v2401_v40  ;;  %v2480_v39 = vld [vmem:[#allocation6 + $0x2c4] ss:$16 sps:$4 sm:$0xff]   ;;  %v2483_v40 = vld [vmem:[#allocation6 + $0x2cc] ss:$16 sps:$4 sm:$0xff]   ;;  %p2804_p13 = por %p2803_p12, %p2802_p11 }
  0x5b   :  { %p2805_p0 = pnand %p2804_p13, %p2798_p10 }
  0x5c   :  { %1667 = vmatpush1.bf16.msra.mxu0 %v2403_v41  ;;  %1831 = vmatpush1.bf16.msra.mxu1 %v2404_v44  ;;  %v2478_v41 = vld [vmem:[#allocation6 + $0x2c0] ss:$16 sps:$4 sm:$0xff]   ;;  %v2486_v44 = vld [vmem:[#allocation6 + $0x2e4] ss:$16 sps:$4 sm:$0xff]  }
  0x5d   :  { %1668 = vmatprep.subr.bf16.mxu0 %v2405_v45  ;;  %1832 = vmatprep.subr.bf16.mxu1 %v2407_v46  ;;  %v2489_v45 = vld [vmem:[#allocation6 + $0x2ec] ss:$16 sps:$4 sm:$0xff]   ;;  %v2484_v46 = vld [vmem:[#allocation6 + $0x2e0] ss:$16 sps:$4 sm:$0xff]  }
  0x60   :  { %1669 = vmatpush1.bf16.msra.mxu0 %v2409_v47  ;;  %1833 = vmatpush1.bf16.msra.mxu1 %v2410_v48  ;;  %v2487_v47 = vld [vmem:[#allocation6 + $0x2e8] ss:$16 sps:$4 sm:$0xff]   ;;  %v2492_v48 = vld [vmem:[#allocation6 + $0x304] ss:$16 sps:$4 sm:$0xff]  }
  0x61   :  { %1670 = vmatprep.subr.bf16.mxu0 %v2411_v50  ;;  %1834 = vmatprep.subr.bf16.mxu1 %v2413_v51  ;;  %v2495_v50 = vld [vmem:[#allocation6 + $0x30c] ss:$16 sps:$4 sm:$0xff]   ;;  %v2490_v51 = vld [vmem:[#allocation6 + $0x300] ss:$16 sps:$4 sm:$0xff]  }
  0x64   :  { %1671 = vmatpush1.bf16.msra.mxu0 %v2415_v53  ;;  %1835 = vmatpush1.bf16.msra.mxu1 %v2416_v55  ;;  %v2498_v53 = vld [vmem:[#allocation6 + $0x324] ss:$16 sps:$4 sm:$0xff]   ;;  %v2496_v55 = vld [vmem:[#allocation6 + $0x320] ss:$16 sps:$4 sm:$0xff]  }
  0x65   :  { %1672 = vmatprep.subr.bf16.mxu0 %v2417_v56  ;;  %1836 = vmatprep.subr.bf16.mxu1 %v2419_v57  ;;  %v2499_v56 = vld [vmem:[#allocation6 + $0x328] ss:$16 sps:$4 sm:$0xff]   ;;  %v2504_v57 = vld [vmem:[#allocation6 + $0x344] ss:$16 sps:$4 sm:$0xff]  }
  0x68   :  { %1673 = vmatpush1.bf16.msra.mxu0 %v2421_v59  ;;  %1837 = vmatpush1.bf16.msra.mxu1 %v2422_v61  ;;  %v2502_v59 = vld [vmem:[#allocation6 + $0x340] ss:$16 sps:$4 sm:$0xff]   ;;  %v2510_v61 = vld [vmem:[#allocation6 + $0x364] ss:$16 sps:$4 sm:$0xff]  }
  0x69   :  { %1674 = vmatprep.subr.bf16.mxu0 %v2423_v62  ;;  %1838 = vmatprep.subr.bf16.mxu1 %v2425_v63  ;;  %v2513_v62 = vld [vmem:[#allocation6 + $0x36c] ss:$16 sps:$4 sm:$0xff]   ;;  %v2508_v63 = vld [vmem:[#allocation6 + $0x360] ss:$16 sps:$4 sm:$0xff]  }
  0x6c   :  { %1675 = vmatpush1.bf16.msra.mxu0 %v2427_v0  ;;  %1839 = vmatpush1.bf16.msra.mxu1 %v2428_v1  ;;  %v2511_v0 = vld [vmem:[#allocation6 + $0x368] ss:$16 sps:$4 sm:$0xff]   ;;  %v2516_v1 = vld [vmem:[#allocation6 + $0x384] ss:$16 sps:$4 sm:$0xff]  }
  0x6d   :  { %1676 = vmatprep.subr.bf16.mxu0 %v2429_v2  ;;  %1840 = vmatprep.subr.bf16.mxu1 %v2431_v3  ;;  %v2519_v2 = vld [vmem:[#allocation6 + $0x38c] ss:$16 sps:$4 sm:$0xff]   ;;  %v2514_v3 = vld [vmem:[#allocation6 + $0x380] ss:$16 sps:$4 sm:$0xff]  }
  0x70   :  { %1677 = vmatpush1.bf16.msra.mxu0 %v2433_v5  ;;  %1841 = vmatpush1.bf16.msra.mxu1 %v2434_v6  ;;  %v2522_v5 = vld [vmem:[#allocation6 + $0x3a4] ss:$16 sps:$4 sm:$0xff]   ;;  %v2525_v6 = vld [vmem:[#allocation6 + $0x3ac] ss:$16 sps:$4 sm:$0xff]  }
  0x71   :  { %1678 = vmatprep.subr.bf16.mxu0 %v2435_v7  ;;  %1842 = vmatprep.subr.bf16.mxu1 %v2437_v8  ;;  %v2520_v7 = vld [vmem:[#allocation6 + $0x3a0] ss:$16 sps:$4 sm:$0xff]   ;;  %v2523_v8 = vld [vmem:[#allocation6 + $0x3a8] ss:$16 sps:$4 sm:$0xff]  }
  0x74   :  { %1679 = vmatpush1.bf16.msra.mxu0 %v2439_v10  ;;  %1843 = vmatpush1.bf16.msra.mxu1 %v2440_v11  ;;  %v2528_v10 = vld [vmem:[#allocation6 + $0x3c4] ss:$16 sps:$4 sm:$0xff]   ;;  %v2531_v11 = vld [vmem:[#allocation6 + $0x3cc] ss:$16 sps:$4 sm:$0xff]  }
  0x75   :  { %1689 = vmatprep.subr.bf16.mxu0 %v2444_v12  ;;  %1853 = vmatprep.subr.bf16.mxu1 %v2447_v13  ;;  %v2526_v12 = vld [vmem:[#allocation6 + $0x3c0] ss:$16 sps:$4 sm:$0xff]   ;;  %v2529_v13 = vld [vmem:[#allocation6 + $0x3c8] ss:$16 sps:$4 sm:$0xff]  }
  0x77   :  { %1681 = vmatmul.mubr.bf16.vlgmr.msra.gmra.mrb[0].mxu0 %v104_v16  ;;  %1845 = vmatmul.mubr.bf16.vlgmr.msra.gmra.mrb[0].mxu1 %v104_v16  ;;  %v2532_v16 = vld [vmem:[#allocation6 + $0x3e0] ss:$16 sps:$4 sm:$0xff]  }
  0x78   :  { %1690 = vmatpush1.bf16.msra.mxu0 %v2442_v15  ;;  %1854 = vmatpush1.bf16.msra.mxu1 %v2445_v17  ;;  %v2537_v15 = vld [vmem:[#allocation6 + $0x3ec] ss:$16 sps:$4 sm:$0xff]   ;;  %v2535_v17 = vld [vmem:[#allocation6 + $0x3e8] ss:$16 sps:$4 sm:$0xff]  }
  0x79   :  { %1691 = vmatprep.subr.bf16.mxu0 %v2450_v18  ;;  %1855 = vmatprep.subr.bf16.mxu1 %v2453_v19  ;;  %v2540_v18 = vld [vmem:[#allocation6 + $0x404] ss:$16 sps:$4 sm:$0xff]   ;;  %v2543_v19 = vld [vmem:[#allocation6 + $0x40c] ss:$16 sps:$4 sm:$0xff]  }
  0x7a   :  { %1721 = vmatprep.mubr.bf16.mxu0 %v107_v20  ;;  %1885 = vmatprep.mubr.bf16.mxu1 %v107_v20  ;;  %v2538_v20 = vld [vmem:[#allocation6 + $0x400] ss:$16 sps:$4 sm:$0xff]  }
  0x7c   :  { %1692 = vmatpush1.bf16.msra.mxu0 %v2448_v21  ;;  %1856 = vmatpush1.bf16.msra.mxu1 %v2451_v22  ;;  %v106_v21 = vpack.c.bf16 %v2895_v9, %v2895_v9  ;;  %v2541_v22 = vld [vmem:[#allocation6 + $0x408] ss:$16 sps:$4 sm:$0xff]   ;;  %v2544_v9 = vld [vmem:[#allocation6 + $0x420] ss:$16 sps:$4 sm:$0xff]  }
  0x7d   :  { %1693 = vmatprep.subr.bf16.mxu0 %v2456_v23  ;;  %1857 = vmatprep.subr.bf16.mxu1 %v2459_v24  ;;  %v2901_v23 = vld [vmem:[#allocation3 + $0x8] sm:$0xff]  ;;  %v2546_v24 = vld [vmem:[#allocation6 + $0x424] ss:$16 sps:$4 sm:$0xff]  }
  0x80   :  { %1694 = vmatpush1.bf16.msra.mxu0 %v2454_v25  ;;  %1858 = vmatpush1.bf16.msra.mxu1 %v2457_v26  ;;  %v2549_v25 = vld [vmem:[#allocation6 + $0x42c] ss:$16 sps:$4 sm:$0xff]   ;;  %v2905_v26 = vrot.slane %v2901_v23, %v2891_v49 }
  0x81   :  { %1695 = vmatprep.subr.bf16.mxu0 %v2462_v27  ;;  %1859 = vmatprep.subr.bf16.mxu1 %v2465_v28  ;;  %v2547_v28 = vld [vmem:[#allocation6 + $0x428] ss:$16 sps:$4 sm:$0xff]  }
  0x82   :  { %v94_v27 = vcombine.high %v2905_v26, %v2905_v26 }
  0x84   :  { %1696 = vmatpush1.bf16.msra.mxu0 %v2460_v29  ;;  %1860 = vmatpush1.bf16.msra.mxu1 %v2463_v30  ;;  %v2552_v29 = vld [vmem:[#allocation6 + $0x444] ss:$16 sps:$4 sm:$0xff]   ;;  %v2555_v30 = vld [vmem:[#allocation6 + $0x44c] ss:$16 sps:$4 sm:$0xff]  }
  0x85   :  { %1697 = vmatprep.subr.bf16.mxu0 %v2468_v31  ;;  %1861 = vmatprep.subr.bf16.mxu1 %v2471_v32  ;;  %v109_v31 = vpack.c.bf16 %v94_v27, %v94_v27  ;;  %v2550_v32 = vld [vmem:[#allocation6 + $0x440] ss:$16 sps:$4 sm:$0xff]  }
  0x86   :  { %v2628_v27 = vld [vmem:[#allocation6 + $0x5e0] ss:$16 sps:$4 sm:$0xff]  }
  0x88   :  { %1698 = vmatpush1.bf16.msra.mxu0 %v2466_v33  ;;  %1862 = vmatpush1.bf16.msra.mxu1 %v2469_v34  ;;  %v2553_v33 = vld [vmem:[#allocation6 + $0x448] ss:$16 sps:$4 sm:$0xff]   ;;  %v2558_v34 = vld [vmem:[#allocation6 + $0x464] ss:$16 sps:$4 sm:$0xff]  }
  0x89   :  { %1699 = vmatprep.subr.bf16.mxu0 %v2474_v35  ;;  %1863 = vmatprep.subr.bf16.mxu1 %v2477_v36  ;;  %v2561_v35 = vld [vmem:[#allocation6 + $0x46c] ss:$16 sps:$4 sm:$0xff]   ;;  %v2556_v36 = vld [vmem:[#allocation6 + $0x460] ss:$16 sps:$4 sm:$0xff]  }
  0x8c   :  { %1700 = vmatpush1.bf16.msra.mxu0 %v2472_v37  ;;  %1864 = vmatpush1.bf16.msra.mxu1 %v2475_v38  ;;  %v2559_v37 = vld [vmem:[#allocation6 + $0x468] ss:$16 sps:$4 sm:$0xff]   ;;  %v2564_v38 = vld [vmem:[#allocation6 + $0x484] ss:$16 sps:$4 sm:$0xff]  }
  0x8d   :  { %1701 = vmatprep.subr.bf16.mxu0 %v2480_v39  ;;  %1865 = vmatprep.subr.bf16.mxu1 %v2483_v40  ;;  %v2567_v39 = vld [vmem:[#allocation6 + $0x48c] ss:$16 sps:$4 sm:$0xff]   ;;  %v2562_v40 = vld [vmem:[#allocation6 + $0x480] ss:$16 sps:$4 sm:$0xff]  }
  0x90   :  { %1702 = vmatpush1.bf16.msra.mxu0 %v2478_v41  ;;  %1866 = vmatpush1.bf16.msra.mxu1 %v2481_v42  ;;  %v2565_v41 = vld [vmem:[#allocation6 + $0x488] ss:$16 sps:$4 sm:$0xff]   ;;  %v2570_v42 = vld [vmem:[#allocation6 + $0x4a4] ss:$16 sps:$4 sm:$0xff]  }
  0x91   :  { %1703 = vmatprep.subr.bf16.mxu0 %v2486_v44  ;;  %1867 = vmatprep.subr.bf16.mxu1 %v2489_v45  ;;  %v2573_v44 = vld [vmem:[#allocation6 + $0x4ac] ss:$16 sps:$4 sm:$0xff]   ;;  %v2568_v45 = vld [vmem:[#allocation6 + $0x4a0] ss:$16 sps:$4 sm:$0xff]  }
  0x94   :  { %1704 = vmatpush1.bf16.msra.mxu0 %v2484_v46  ;;  %1868 = vmatpush1.bf16.msra.mxu1 %v2487_v47  ;;  %v2571_v46 = vld [vmem:[#allocation6 + $0x4a8] ss:$16 sps:$4 sm:$0xff]   ;;  %v2576_v47 = vld [vmem:[#allocation6 + $0x4c4] ss:$16 sps:$4 sm:$0xff]  }
  0x95   :  { %1705 = vmatprep.subr.bf16.mxu0 %v2492_v48  ;;  %1869 = vmatprep.subr.bf16.mxu1 %v2495_v50  ;;  %v2579_v48 = vld [vmem:[#allocation6 + $0x4cc] ss:$16 sps:$4 sm:$0xff]   ;;  %v2574_v50 = vld [vmem:[#allocation6 + $0x4c0] ss:$16 sps:$4 sm:$0xff]  }
  0x98   :  { %1706 = vmatpush1.bf16.msra.mxu0 %v2490_v51  ;;  %1870 = vmatpush1.bf16.msra.mxu1 %v2493_v52  ;;  %v2577_v51 = vld [vmem:[#allocation6 + $0x4c8] ss:$16 sps:$4 sm:$0xff]   ;;  %v2582_v52 = vld [vmem:[#allocation6 + $0x4e4] ss:$16 sps:$4 sm:$0xff]  }
  0x99   :  { %1707 = vmatprep.subr.bf16.mxu0 %v2498_v53  ;;  %1871 = vmatprep.subr.bf16.mxu1 %v2501_v54  ;;  %v2585_v53 = vld [vmem:[#allocation6 + $0x4ec] ss:$16 sps:$4 sm:$0xff]   ;;  %v2580_v54 = vld [vmem:[#allocation6 + $0x4e0] ss:$16 sps:$4 sm:$0xff]  }
  0x9c   :  { %1708 = vmatpush1.bf16.msra.mxu0 %v2496_v55  ;;  %1872 = vmatpush1.bf16.msra.mxu1 %v2499_v56  ;;  %v2583_v55 = vld [vmem:[#allocation6 + $0x4e8] ss:$16 sps:$4 sm:$0xff]   ;;  %v2588_v56 = vld [vmem:[#allocation6 + $0x504] ss:$16 sps:$4 sm:$0xff]  }
  0x9d   :  { %1709 = vmatprep.subr.bf16.mxu0 %v2504_v57  ;;  %1873 = vmatprep.subr.bf16.mxu1 %v2507_v58  ;;  %v2591_v57 = vld [vmem:[#allocation6 + $0x50c] ss:$16 sps:$4 sm:$0xff]   ;;  %v2586_v58 = vld [vmem:[#allocation6 + $0x500] ss:$16 sps:$4 sm:$0xff]  }
  0xa0   :  { %1710 = vmatpush1.bf16.msra.mxu0 %v2502_v59  ;;  %1874 = vmatpush1.bf16.msra.mxu1 %v2505_v60  ;;  %v2589_v59 = vld [vmem:[#allocation6 + $0x508] ss:$16 sps:$4 sm:$0xff]   ;;  %v2594_v60 = vld [vmem:[#allocation6 + $0x524] ss:$16 sps:$4 sm:$0xff]  }
  0xa1   :  { %1711 = vmatprep.subr.bf16.mxu0 %v2510_v61  ;;  %1875 = vmatprep.subr.bf16.mxu1 %v2513_v62  ;;  %v2597_v61 = vld [vmem:[#allocation6 + $0x52c] ss:$16 sps:$4 sm:$0xff]   ;;  %v2592_v62 = vld [vmem:[#allocation6 + $0x520] ss:$16 sps:$4 sm:$0xff]  }
  0xa4   :  { %1712 = vmatpush1.bf16.msra.mxu0 %v2508_v63  ;;  %1876 = vmatpush1.bf16.msra.mxu1 %v2511_v0  ;;  %v2595_v63 = vld [vmem:[#allocation6 + $0x528] ss:$16 sps:$4 sm:$0xff]   ;;  %v2600_v0 = vld [vmem:[#allocation6 + $0x544] ss:$16 sps:$4 sm:$0xff]  }
  0xa5   :  { %1713 = vmatprep.subr.bf16.mxu0 %v2516_v1  ;;  %1877 = vmatprep.subr.bf16.mxu1 %v2519_v2  ;;  %v2603_v1 = vld [vmem:[#allocation6 + $0x54c] ss:$16 sps:$4 sm:$0xff]   ;;  %v2598_v2 = vld [vmem:[#allocation6 + $0x540] ss:$16 sps:$4 sm:$0xff]  }
  0xa8   :  { %1714 = vmatpush1.bf16.msra.mxu0 %v2514_v3  ;;  %1878 = vmatpush1.bf16.msra.mxu1 %v2517_v4  ;;  %v2601_v3 = vld [vmem:[#allocation6 + $0x548] ss:$16 sps:$4 sm:$0xff]   ;;  %v2606_v4 = vld [vmem:[#allocation6 + $0x564] ss:$16 sps:$4 sm:$0xff]  }
  0xa9   :  { %1715 = vmatprep.subr.bf16.mxu0 %v2522_v5  ;;  %1879 = vmatprep.subr.bf16.mxu1 %v2525_v6  ;;  %v2609_v5 = vld [vmem:[#allocation6 + $0x56c] ss:$16 sps:$4 sm:$0xff]   ;;  %v2604_v6 = vld [vmem:[#allocation6 + $0x560] ss:$16 sps:$4 sm:$0xff]  }
  0xac   :  { %1716 = vmatpush1.bf16.msra.mxu0 %v2520_v7  ;;  %1880 = vmatpush1.bf16.msra.mxu1 %v2523_v8  ;;  %v2607_v7 = vld [vmem:[#allocation6 + $0x568] ss:$16 sps:$4 sm:$0xff]   ;;  %v2612_v8 = vld [vmem:[#allocation6 + $0x584] ss:$16 sps:$4 sm:$0xff]  }
  0xad   :  { %1717 = vmatprep.subr.bf16.mxu0 %v2528_v10  ;;  %1881 = vmatprep.subr.bf16.mxu1 %v2531_v11  ;;  %v2615_v10 = vld [vmem:[#allocation6 + $0x58c] ss:$16 sps:$4 sm:$0xff]   ;;  %v2610_v11 = vld [vmem:[#allocation6 + $0x580] ss:$16 sps:$4 sm:$0xff]  }
  0xb0   :  { %1718 = vmatpush1.bf16.msra.mxu0 %v2526_v12  ;;  %1882 = vmatpush1.bf16.msra.mxu1 %v2529_v13  ;;  %v2613_v12 = vld [vmem:[#allocation6 + $0x588] ss:$16 sps:$4 sm:$0xff]   ;;  %v2618_v13 = vld [vmem:[#allocation6 + $0x5a4] ss:$16 sps:$4 sm:$0xff]  }
  0xb1   :  { %1719 = vmatprep.subr.bf16.mxu0 %v2534_v14  ;;  %1883 = vmatprep.subr.bf16.mxu1 %v2537_v15  ;;  %v2621_v14 = vld [vmem:[#allocation6 + $0x5ac] ss:$16 sps:$4 sm:$0xff]   ;;  %v2616_v15 = vld [vmem:[#allocation6 + $0x5a0] ss:$16 sps:$4 sm:$0xff]  }
  0xb4   :  { %1720 = vmatpush1.bf16.msra.mxu0 %v2532_v16  ;;  %1884 = vmatpush1.bf16.msra.mxu1 %v2535_v17  ;;  %v2619_v16 = vld [vmem:[#allocation6 + $0x5a8] ss:$16 sps:$4 sm:$0xff]   ;;  %v2624_v17 = vld [vmem:[#allocation6 + $0x5c4] ss:$16 sps:$4 sm:$0xff]  }
  0xb5   :  { %1730 = vmatprep.subr.bf16.mxu0 %v2540_v18  ;;  %1894 = vmatprep.subr.bf16.mxu1 %v2543_v19  ;;  %v2627_v18 = vld [vmem:[#allocation6 + $0x5cc] ss:$16 sps:$4 sm:$0xff]   ;;  %v79_v19 = vcombine.high %v2901_v23, %v2901_v23 }
  0xb7   :  { %1722 = vmatmul.mubr.bf16.vlgmr.msra.gmra.mrb[0].mxu0 %v106_v21  ;;  %1886 = vmatmul.mubr.bf16.vlgmr.msra.gmra.mrb[0].mxu1 %v106_v21  ;;  %v2625_v21 = vld [vmem:[#allocation6 + $0x5c8] ss:$16 sps:$4 sm:$0xff]  }
  0xb8   :  { %1731 = vmatpush1.bf16.msra.mxu0 %v2538_v20  ;;  %1895 = vmatpush1.bf16.msra.mxu1 %v2541_v22  ;;  %v2622_v20 = vld [vmem:[#allocation6 + $0x5c0] ss:$16 sps:$4 sm:$0xff]   ;;  %v2630_v22 = vld [vmem:[#allocation6 + $0x5e4] ss:$16 sps:$4 sm:$0xff]  }
  0xb9   :  { %1732 = vmatprep.subr.bf16.mxu0 %v2546_v24  ;;  %1896 = vmatprep.subr.bf16.mxu1 %v2549_v25  ;;  %v2633_v24 = vld [vmem:[#allocation6 + $0x5ec] ss:$16 sps:$4 sm:$0xff]   ;;  %v2912_v25 = vrot.slane %v79_v19, %v2891_v49  ;;  %v2709_v19 = vld [vmem:[#allocation6 + $0x788] ss:$16 sps:$4 sm:$0xff]  }
  0xba   :  { %1762 = vmatprep.mubr.bf16.mxu0 %v109_v31  ;;  %1926 = vmatprep.mubr.bf16.mxu1 %v109_v31  ;;  %v2634_v31 = vld [vmem:[#allocation6 + $0x600] ss:$16 sps:$4 sm:$0xff]  }
  0xbb   :  { %v95_v23 = vcombine.high %v2912_v25, %v2912_v25 }
  0xbc   :  { %1733 = vmatpush1.bf16.msra.mxu0 %v2544_v9  ;;  %1897 = vmatpush1.bf16.msra.mxu1 %v2547_v28  ;;  %v2631_v9 = vld [vmem:[#allocation6 + $0x5e8] ss:$16 sps:$4 sm:$0xff]   ;;  %v2636_v28 = vld [vmem:[#allocation6 + $0x604] ss:$16 sps:$4 sm:$0xff]  }
  0xbd   :  { %1734 = vmatprep.subr.bf16.mxu0 %v2552_v29  ;;  %1898 = vmatprep.subr.bf16.mxu1 %v2555_v30  ;;  %v2639_v29 = vld [vmem:[#allocation6 + $0x60c] ss:$16 sps:$4 sm:$0xff]   ;;  %v108_v30 = vpack.c.bf16 %v2905_v26, %v2905_v26  ;;  %v2646_v26 = vld [vmem:[#allocation6 + $0x640] ss:$16 sps:$4 sm:$0xff]  }
  0xc0   :  { %1735 = vmatpush1.bf16.msra.mxu0 %v2550_v32  ;;  %1899 = vmatpush1.bf16.msra.mxu1 %v2553_v33  ;;  %v2637_v32 = vld [vmem:[#allocation6 + $0x608] ss:$16 sps:$4 sm:$0xff]   ;;  %v2642_v33 = vld [vmem:[#allocation6 + $0x624] ss:$16 sps:$4 sm:$0xff]  }
  0xc1   :  { %1736 = vmatprep.subr.bf16.mxu0 %v2558_v34  ;;  %1900 = vmatprep.subr.bf16.mxu1 %v2561_v35  ;;  %v2645_v34 = vld [vmem:[#allocation6 + $0x62c] ss:$16 sps:$4 sm:$0xff]   ;;  %v111_v35 = vpack.c.bf16 %v95_v23, %v95_v23  ;;  %v2726_v23 = vld [vmem:[#allocation6 + $0x7e4] ss:$16 sps:$4 sm:$0xff]  }
  0xc4   :  { %1737 = vmatpush1.bf16.msra.mxu0 %v2556_v36  ;;  %1901 = vmatpush1.bf16.msra.mxu1 %v2559_v37  ;;  %v2640_v36 = vld [vmem:[#allocation6 + $0x620] ss:$16 sps:$4 sm:$0xff]   ;;  %v2643_v37 = vld [vmem:[#allocation6 + $0x628] ss:$16 sps:$4 sm:$0xff]  }
  0xc5   :  { %1738 = vmatprep.subr.bf16.mxu0 %v2564_v38  ;;  %1902 = vmatprep.subr.bf16.mxu1 %v2567_v39  ;;  %v2648_v38 = vld [vmem:[#allocation6 + $0x644] ss:$16 sps:$4 sm:$0xff]   ;;  %v2651_v39 = vld [vmem:[#allocation6 + $0x64c] ss:$16 sps:$4 sm:$0xff]  }
  0xc8   :  { %1739 = vmatpush1.bf16.msra.mxu0 %v2562_v40  ;;  %1903 = vmatpush1.bf16.msra.mxu1 %v2565_v41  ;;  %v2649_v40 = vld [vmem:[#allocation6 + $0x648] ss:$16 sps:$4 sm:$0xff]   ;;  %v2654_v41 = vld [vmem:[#allocation6 + $0x664] ss:$16 sps:$4 sm:$0xff]  }
  0xc9   :  { %1740 = vmatprep.subr.bf16.mxu0 %v2570_v42  ;;  %1904 = vmatprep.subr.bf16.mxu1 %v2573_v44  ;;  %v2657_v42 = vld [vmem:[#allocation6 + $0x66c] ss:$16 sps:$4 sm:$0xff]   ;;  %v2652_v44 = vld [vmem:[#allocation6 + $0x660] ss:$16 sps:$4 sm:$0xff]  }
  0xcc   :  { %1741 = vmatpush1.bf16.msra.mxu0 %v2568_v45  ;;  %1905 = vmatpush1.bf16.msra.mxu1 %v2571_v46  ;;  %v2655_v45 = vld [vmem:[#allocation6 + $0x668] ss:$16 sps:$4 sm:$0xff]   ;;  %v2660_v46 = vld [vmem:[#allocation6 + $0x684] ss:$16 sps:$4 sm:$0xff]  }
  0xcd   :  { %1742 = vmatprep.subr.bf16.mxu0 %v2576_v47  ;;  %1906 = vmatprep.subr.bf16.mxu1 %v2579_v48  ;;  %v2663_v47 = vld [vmem:[#allocation6 + $0x68c] ss:$16 sps:$4 sm:$0xff]   ;;  %v2658_v48 = vld [vmem:[#allocation6 + $0x680] ss:$16 sps:$4 sm:$0xff]  }
  0xd0   :  { %1743 = vmatpush1.bf16.msra.mxu0 %v2574_v50  ;;  %1907 = vmatpush1.bf16.msra.mxu1 %v2577_v51  ;;  %v2661_v50 = vld [vmem:[#allocation6 + $0x688] ss:$16 sps:$4 sm:$0xff]   ;;  %v2666_v51 = vld [vmem:[#allocation6 + $0x6a4] ss:$16 sps:$4 sm:$0xff]  }
  0xd1   :  { %1744 = vmatprep.subr.bf16.mxu0 %v2582_v52  ;;  %1908 = vmatprep.subr.bf16.mxu1 %v2585_v53  ;;  %v2669_v52 = vld [vmem:[#allocation6 + $0x6ac] ss:$16 sps:$4 sm:$0xff]   ;;  %v2664_v53 = vld [vmem:[#allocation6 + $0x6a0] ss:$16 sps:$4 sm:$0xff]  }
  0xd4   :  { %1745 = vmatpush1.bf16.msra.mxu0 %v2580_v54  ;;  %1909 = vmatpush1.bf16.msra.mxu1 %v2583_v55  ;;  %v2667_v54 = vld [vmem:[#allocation6 + $0x6a8] ss:$16 sps:$4 sm:$0xff]   ;;  %v2672_v55 = vld [vmem:[#allocation6 + $0x6c4] ss:$16 sps:$4 sm:$0xff]  }
  0xd5   :  { %1746 = vmatprep.subr.bf16.mxu0 %v2588_v56  ;;  %1910 = vmatprep.subr.bf16.mxu1 %v2591_v57  ;;  %v2675_v56 = vld [vmem:[#allocation6 + $0x6cc] ss:$16 sps:$4 sm:$0xff]   ;;  %v2670_v57 = vld [vmem:[#allocation6 + $0x6c0] ss:$16 sps:$4 sm:$0xff]  }
  0xd8   :  { %1747 = vmatpush1.bf16.msra.mxu0 %v2586_v58  ;;  %1911 = vmatpush1.bf16.msra.mxu1 %v2589_v59  ;;  %v2673_v58 = vld [vmem:[#allocation6 + $0x6c8] ss:$16 sps:$4 sm:$0xff]   ;;  %v2678_v59 = vld [vmem:[#allocation6 + $0x6e4] ss:$16 sps:$4 sm:$0xff]  }
  0xd9   :  { %1748 = vmatprep.subr.bf16.mxu0 %v2594_v60  ;;  %1912 = vmatprep.subr.bf16.mxu1 %v2597_v61  ;;  %v2681_v60 = vld [vmem:[#allocation6 + $0x6ec] ss:$16 sps:$4 sm:$0xff]   ;;  %v2676_v61 = vld [vmem:[#allocation6 + $0x6e0] ss:$16 sps:$4 sm:$0xff]  }
  0xdc   :  { %1749 = vmatpush1.bf16.msra.mxu0 %v2592_v62  ;;  %1913 = vmatpush1.bf16.msra.mxu1 %v2595_v63  ;;  %v2679_v62 = vld [vmem:[#allocation6 + $0x6e8] ss:$16 sps:$4 sm:$0xff]   ;;  %v2684_v63 = vld [vmem:[#allocation6 + $0x704] ss:$16 sps:$4 sm:$0xff]  }
  0xdd   :  { %1750 = vmatprep.subr.bf16.mxu0 %v2600_v0  ;;  %1914 = vmatprep.subr.bf16.mxu1 %v2603_v1  ;;  %v2687_v0 = vld [vmem:[#allocation6 + $0x70c] ss:$16 sps:$4 sm:$0xff]   ;;  %v2682_v1 = vld [vmem:[#allocation6 + $0x700] ss:$16 sps:$4 sm:$0xff]  }
  0xe0   :  { %1751 = vmatpush1.bf16.msra.mxu0 %v2598_v2  ;;  %1915 = vmatpush1.bf16.msra.mxu1 %v2601_v3  ;;  %v2685_v2 = vld [vmem:[#allocation6 + $0x708] ss:$16 sps:$4 sm:$0xff]   ;;  %v2690_v3 = vld [vmem:[#allocation6 + $0x724] ss:$16 sps:$4 sm:$0xff]  }
  0xe1   :  { %1752 = vmatprep.subr.bf16.mxu0 %v2606_v4  ;;  %1916 = vmatprep.subr.bf16.mxu1 %v2609_v5  ;;  %v2693_v4 = vld [vmem:[#allocation6 + $0x72c] ss:$16 sps:$4 sm:$0xff]   ;;  %v2688_v5 = vld [vmem:[#allocation6 + $0x720] ss:$16 sps:$4 sm:$0xff]  }
  0xe4   :  { %1753 = vmatpush1.bf16.msra.mxu0 %v2604_v6  ;;  %1917 = vmatpush1.bf16.msra.mxu1 %v2607_v7  ;;  %v2691_v6 = vld [vmem:[#allocation6 + $0x728] ss:$16 sps:$4 sm:$0xff]   ;;  %v2696_v7 = vld [vmem:[#allocation6 + $0x744] ss:$16 sps:$4 sm:$0xff]  }
  0xe5   :  { %1754 = vmatprep.subr.bf16.mxu0 %v2612_v8  ;;  %1918 = vmatprep.subr.bf16.mxu1 %v2615_v10  ;;  %v2699_v8 = vld [vmem:[#allocation6 + $0x74c] ss:$16 sps:$4 sm:$0xff]   ;;  %v2694_v10 = vld [vmem:[#allocation6 + $0x740] ss:$16 sps:$4 sm:$0xff]  }
  0xe8   :  { %1755 = vmatpush1.bf16.msra.mxu0 %v2610_v11  ;;  %1919 = vmatpush1.bf16.msra.mxu1 %v2613_v12  ;;  %v2697_v11 = vld [vmem:[#allocation6 + $0x748] ss:$16 sps:$4 sm:$0xff]   ;;  %v2702_v12 = vld [vmem:[#allocation6 + $0x764] ss:$16 sps:$4 sm:$0xff]  }
  0xe9   :  { %1756 = vmatprep.subr.bf16.mxu0 %v2618_v13  ;;  %1920 = vmatprep.subr.bf16.mxu1 %v2621_v14  ;;  %v2705_v13 = vld [vmem:[#allocation6 + $0x76c] ss:$16 sps:$4 sm:$0xff]   ;;  %v2700_v14 = vld [vmem:[#allocation6 + $0x760] ss:$16 sps:$4 sm:$0xff]  }
  0xec   :  { %1757 = vmatpush1.bf16.msra.mxu0 %v2616_v15  ;;  %1921 = vmatpush1.bf16.msra.mxu1 %v2619_v16  ;;  %v2703_v15 = vld [vmem:[#allocation6 + $0x768] ss:$16 sps:$4 sm:$0xff]   ;;  %v2708_v16 = vld [vmem:[#allocation6 + $0x784] ss:$16 sps:$4 sm:$0xff]  }
  0xed   :  { %1758 = vmatprep.subr.bf16.mxu0 %v2624_v17  ;;  %1922 = vmatprep.subr.bf16.mxu1 %v2627_v18  ;;  %v2711_v17 = vld [vmem:[#allocation6 + $0x78c] ss:$16 sps:$4 sm:$0xff]   ;;  %v2706_v18 = vld [vmem:[#allocation6 + $0x780] ss:$16 sps:$4 sm:$0xff]  }
  0xf0   :  { %1759 = vmatpush1.bf16.msra.mxu0 %v2622_v20  ;;  %1923 = vmatpush1.bf16.msra.mxu1 %v2625_v21  ;;  %v2714_v20 = vld [vmem:[#allocation6 + $0x7a4] ss:$16 sps:$4 sm:$0xff]   ;;  %v2717_v21 = vld [vmem:[#allocation6 + $0x7ac] ss:$16 sps:$4 sm:$0xff]  }
  0xf1   :  { %1760 = vmatprep.subr.bf16.mxu0 %v2630_v22  ;;  %1924 = vmatprep.subr.bf16.mxu1 %v2633_v24  ;;  %v2712_v22 = vld [vmem:[#allocation6 + $0x7a0] ss:$16 sps:$4 sm:$0xff]   ;;  %v2715_v24 = vld [vmem:[#allocation6 + $0x7a8] ss:$16 sps:$4 sm:$0xff]  }
  0xf4   :  { %1761 = vmatpush1.bf16.msra.mxu0 %v2628_v27  ;;  %1925 = vmatpush1.bf16.msra.mxu1 %v2631_v9  ;;  %v2720_v27 = vld [vmem:[#allocation6 + $0x7c4] ss:$16 sps:$4 sm:$0xff]   ;;  %v2723_v9 = vld [vmem:[#allocation6 + $0x7cc] ss:$16 sps:$4 sm:$0xff]  }
  0xf5   :  { %1771 = vmatprep.subr.bf16.mxu0 %v2636_v28  ;;  %1935 = vmatprep.subr.bf16.mxu1 %v2639_v29  ;;  %v2718_v28 = vld [vmem:[#allocation6 + $0x7c0] ss:$16 sps:$4 sm:$0xff]   ;;  %v2721_v29 = vld [vmem:[#allocation6 + $0x7c8] ss:$16 sps:$4 sm:$0xff]  }
  0xf7   :  { %1763 = vmatmul.mubr.bf16.vlgmr.msra.gmra.mrb[0].mxu0 %v108_v30  ;;  %1927 = vmatmul.mubr.bf16.vlgmr.msra.gmra.mrb[0].mxu1 %v108_v30  ;;  %v2729_v30 = vld [vmem:[#allocation6 + $0x7ec] ss:$16 sps:$4 sm:$0xff]  }
  0xf8   :  { %1772 = vmatpush1.bf16.msra.mxu0 %v2634_v31  ;;  %1936 = vmatpush1.bf16.msra.mxu1 %v2637_v32  ;;  %v2724_v31 = vld [vmem:[#allocation6 + $0x7e0] ss:$16 sps:$4 sm:$0xff]   ;;  %v2727_v32 = vld [vmem:[#allocation6 + $0x7e8] ss:$16 sps:$4 sm:$0xff]  }
  0xf9   :  { %1773 = vmatprep.subr.bf16.mxu0 %v2642_v33  ;;  %1937 = vmatprep.subr.bf16.mxu1 %v2645_v34  ;;  %v110_v33 = vpack.c.bf16 %v2912_v25, %v2912_v25  ;;  %v2008_v34 = vsub.s32 0, %v2888_v43 }
  0xfa   :  { %1803 = vmatprep.mubr.bf16.mxu0 %v111_v35  ;;  %1967 = vmatprep.mubr.bf16.mxu1 %v111_v35  ;;  %v2012_v35 = vsub.s32 1, %v2888_v43 }
  0xfc   :  { %1774 = vmatpush1.bf16.msra.mxu0 %v2640_v36  ;;  %1938 = vmatpush1.bf16.msra.mxu1 %v2643_v37  ;;  %v2016_v36 = vsub.s32 2, %v2888_v43  ;;  %v2020_v37 = vsub.s32 3, %v2888_v43 }
  0xfd   :  { %1775 = vmatprep.subr.bf16.mxu0 %v2648_v38  ;;  %1939 = vmatprep.subr.bf16.mxu1 %v2651_v39  ;;  %v2004_v38 = vld [vmem:[#allocation8] sm:$0xf] }
  0xfe   :  { %v2009_v39 = vrot.slane %v2004_v38, %v2008_v34 }
 0x100   :  { %1776 = vmatpush1.bf16.msra.mxu0 %v2646_v26  ;;  %1940 = vmatpush1.bf16.msra.mxu1 %v2649_v40  ;;  %v2013_v26 = vrot.slane %v2004_v38, %v2012_v35  ;;  %v2017_v40 = vrot.slane %v2004_v38, %v2016_v36 }
 0x101   :  { %1777 = vmatprep.subr.bf16.mxu0 %v2654_v41  ;;  %1941 = vmatprep.subr.bf16.mxu1 %v2657_v42  ;;  %v2021_v41 = vrot.slane %v2004_v38, %v2020_v37 }
 0x102   :  { %v2022_v42 = vcombine.low %v2009_v39, %v2013_v26 }
 0x104   :  { %1778 = vmatpush1.bf16.msra.mxu0 %v2652_v44  ;;  %1942 = vmatpush1.bf16.msra.mxu1 %v2655_v45  ;;  %v2023_v44 = vcombine.low %v2017_v40, %v2021_v41 }
 0x105   :  { %1779 = vmatprep.subr.bf16.mxu0 %v2660_v46  ;;  %1943 = vmatprep.subr.bf16.mxu1 %v2663_v47  ;;  %v2030_v46 = vrot.slane %v2022_v42, %v2891_v49 }
 0x106   :  { %v2037_v47 = vrot.slane %v2023_v44, %v2891_v49 }
 0x108   :  { %1780 = vmatpush1.bf16.msra.mxu0 %v2658_v48  ;;  %1944 = vmatpush1.bf16.msra.mxu1 %v2661_v50 }
 0x109   :  { %1781 = vmatprep.subr.bf16.mxu0 %v2666_v51  ;;  %1945 = vmatprep.subr.bf16.mxu1 %v2669_v52 }
 0x10c   :  { %1782 = vmatpush1.bf16.msra.mxu0 %v2664_v53  ;;  %1946 = vmatpush1.bf16.msra.mxu1 %v2667_v54 }
 0x10d   :  { %1783 = vmatprep.subr.bf16.mxu0 %v2672_v55  ;;  %1947 = vmatprep.subr.bf16.mxu1 %v2675_v56 }
 0x110   :  { %1784 = vmatpush1.bf16.msra.mxu0 %v2670_v57  ;;  %1948 = vmatpush1.bf16.msra.mxu1 %v2673_v58  ;;  %v2038_v58 = vcombine.low %v2030_v46, %v2037_v47 }
 0x111   :  { %1785 = vmatprep.subr.bf16.mxu0 %v2678_v59  ;;  %1949 = vmatprep.subr.bf16.mxu1 %v2681_v60 }
 0x114   :  { %1786 = vmatpush1.bf16.msra.mxu0 %v2676_v61  ;;  %1950 = vmatpush1.bf16.msra.mxu1 %v2679_v62 }
 0x115   :  { %1787 = vmatprep.subr.bf16.mxu0 %v2684_v63  ;;  %1951 = vmatprep.subr.bf16.mxu1 %v2687_v0 }
 0x118   :  { %1788 = vmatpush1.bf16.msra.mxu0 %v2682_v1  ;;  %1952 = vmatpush1.bf16.msra.mxu1 %v2685_v2 }
 0x119   :  { %1789 = vmatprep.subr.bf16.mxu0 %v2690_v3  ;;  %1953 = vmatprep.subr.bf16.mxu1 %v2693_v4 }
 0x11c   :  { %1790 = vmatpush1.bf16.msra.mxu0 %v2688_v5  ;;  %1954 = vmatpush1.bf16.msra.mxu1 %v2691_v6 }
 0x11d   :  { %1791 = vmatprep.subr.bf16.mxu0 %v2696_v7  ;;  %1955 = vmatprep.subr.bf16.mxu1 %v2699_v8 }
 0x120   :  { %1792 = vmatpush1.bf16.msra.mxu0 %v2694_v10  ;;  %1956 = vmatpush1.bf16.msra.mxu1 %v2697_v11 }
 0x121   :  { %1793 = vmatprep.subr.bf16.mxu0 %v2702_v12  ;;  %1957 = vmatprep.subr.bf16.mxu1 %v2705_v13 }
 0x124   :  { %1794 = vmatpush1.bf16.msra.mxu0 %v2700_v14  ;;  %1958 = vmatpush1.bf16.msra.mxu1 %v2703_v15 }
 0x125   :  { %1795 = vmatprep.subr.bf16.mxu0 %v2708_v16  ;;  %1959 = vmatprep.subr.bf16.mxu1 %v2711_v17 }
 0x128   :  { %1796 = vmatpush1.bf16.msra.mxu0 %v2706_v18  ;;  %1960 = vmatpush1.bf16.msra.mxu1 %v2709_v19 }
 0x129   :  { %1797 = vmatprep.subr.bf16.mxu0 %v2714_v20  ;;  %1961 = vmatprep.subr.bf16.mxu1 %v2717_v21 }
 0x12c   :  { %1798 = vmatpush1.bf16.msra.mxu0 %v2712_v22  ;;  %1962 = vmatpush1.bf16.msra.mxu1 %v2715_v24 }
 0x12d   :  { %1799 = vmatprep.subr.bf16.mxu0 %v2720_v27  ;;  %1963 = vmatprep.subr.bf16.mxu1 %v2723_v9 }
 0x130   :  { %1800 = vmatpush1.bf16.msra.mxu0 %v2718_v28  ;;  %1964 = vmatpush1.bf16.msra.mxu1 %v2721_v29 }
 0x131   :  { %1801 = vmatprep.subr.bf16.mxu0 %v2726_v23  ;;  %1965 = vmatprep.subr.bf16.mxu1 %v2729_v30 }
 0x134   :  { %1802 = vmatpush1.bf16.msra.mxu0 %v2724_v31  ;;  %1966 = vmatpush1.bf16.msra.mxu1 %v2727_v32 }
 0x137   :  { %1804 = vmatmul.mubr.bf16.vlgmr.msra.gmra.mrb[0].mxu0 %v110_v33  ;;  %1968 = vmatmul.mubr.bf16.vlgmr.msra.gmra.mrb[0].mxu1 %v110_v33 }
 0x20a   :  { %v1805_v25 = vpop.f32.mrb[0].mxu0  ;;  %v1969_v45 = vpop.f32.mrb[0].mxu1 }
 0x20b   :  { %v1807_v48 = vpop.f32.mrb[1].mxu0  ;;  %v1971_v50 = vpop.f32.mrb[1].mxu1 }
 0x20c   :  { %v1980_v51 = vcombine.low %v1805_v25, %v1807_v48  ;;  %v1981_v52 = vcombine.low %v1969_v45, %v1971_v50  ;;  %v1809_v53 = vpop.f32.mrb[2].mxu0  ;;  %v1973_v54 = vpop.f32.mrb[2].mxu1 }
 0x20d   :  { %v1810_v43 = vpop.f32.mrb[3].mxu0  ;;  %v1974_v55 = vpop.f32.mrb[3].mxu1 }
 0x20e   :  { %v1988_v56 = vrot.slane %v1980_v51, %v2891_v49  ;;  %v1995_v57 = vrot.slane %v1981_v52, %v2891_v49 }
 0x210   :  { %v1996_v59 = vcombine.low %v1988_v56, %v1995_v57 }
 0x212   :  { %v2040_v60 = vadd.f32 %v2038_v58, %v1996_v59 }
 0x214   :  { %2041 = vst [vmem:[#allocation9] sm:$0xff] %v2040_v60 }
 0x215   :  { %2808 = shalt.err (!%p2805_p0)
}
 0x216   :  { %s2809_s25 = scalar_lea.hbm %s2943_s3, 128 }
 0x217   :  { %p2810_p1 = scmp.ne.s32.totalorder %s2943_s3, %s2809_s25  ;;  %p2813_p2 = scmp.lt.u32.totalorder %s2809_s25, %s2943_s3 }
 0x219   :  { %p2815_p3 = pnand %p2813_p2, %p2810_p1 }
 0x21b   :  { %2818 = shalt.err (!%p2815_p3)
}
 0x21c   :  { %2051 = dma.vmem_to_hbm [thread:$0]  %s2049_s21, 128, %s2943_s3, [#allocation5]  }
 0x21d   :  { %2823 = dma.done.wait [#allocation5], 128  }
 0x21e   :  { %2824 = vsyncadd [#allocation5], 4294967168 }
 0x21f   :  { %2055 = vsyncpa [#allocation4], 1 }
 0x220   :  { %2056 = vsyncpa [#allocation7], 1 }
 0x221   :  { %2057 = vsyncpa [#allocation5], 1 }

</bundles_post_ra>
